<compile_context>
chip_gen: v7x
topology: tpu7x:2x2x1
jax: 0.10.0
libtpu: 0.0.40
codegen_flags: <defaults>
</compile_context>

<pallas_src>
import numpy as np
import jax
import jax.numpy as jnp
from jax.experimental import pallas as pl
from jax.experimental.pallas import tpu as pltpu

# ----------------------------- configuration -----------------------------------
QUBITS = 4          # env QUBITS default
Q_DEPTH = 6         # env Q_DEPTH default
IN_FEATURES = 16
NO_CLASSES = 3
BATCH = 8
DIM = 2 ** QUBITS   # statevector dimension = 16
MAX_BATCH_TILE = 512


# ------------------------- circuit matrix construction --------------------------
def _single_qubit_op(op2x2, wire, n_qubits):
    """Full 2^n x 2^n operator with `op2x2` on `wire` (wire 0 = least-significant bit)."""
    mats = [np.eye(2)] * n_qubits
    mats[wire] = op2x2
    m = np.array([[1.0]])
    for w in reversed(range(n_qubits)):     # MSB first in the kron chain
        m = np.kron(m, mats[w])
    return m


def _cnot(control, target, n_qubits):
    dim = 2 ** n_qubits
    m = np.zeros((dim, dim))
    for j in range(dim):
        nj = j ^ (1 << target) if (j >> control) & 1 else j
        m[nj, j] = 1.0
    return m


def build_circuit_constants(q_params_np):
    """Precompute fixed matrices for the variational circuit (plain-NumPy glue).

    Returns:
      gk_T      (QUBITS, DIM, DIM) -- only used by the pure-JAX reference
      u_fixed_T (DIM, DIM)         -- fixed variational layers, transposed for row vectors
      zdiag     (DIM, QUBITS)      -- PauliZ diagonal per wire (reference / fusion input)
    """
    G = np.array([[0.0, -1.0], [1.0, 0.0]])            # -i*Y generator of RY (real)
    gk_T = np.stack(
        [_single_qubit_op(G, k, QUBITS).T for k in range(QUBITS)], axis=0
    ).astype(np.float32)

    # CNOT ring entangler 0->1->2->3->0 (applied in sequence).
    ring = np.eye(DIM)
    for c in range(QUBITS):
        t = (c + 1) % QUBITS
        ring = _cnot(c, t, QUBITS) @ ring

    # Fixed part of the circuit: q_depth layers of RY(params) then CNOT ring.
    u_fixed = np.eye(DIM)
    for d in range(Q_DEPTH):
        layer = np.eye(DIM)
        for k in range(QUBITS):
            theta = float(q_params_np[k, d])
            gk = _single_qubit_op(G, k, QUBITS)
            ry = np.cos(theta / 2.0) * np.eye(DIM) + np.sin(theta / 2.0) * gk
            layer = ry @ layer
        u_fixed = (ring @ layer) @ u_fixed
    u_fixed_T = u_fixed.T.astype(np.float32)

    # PauliZ diagonal signs: zdiag[j, k] = 1 - 2*bit_k(j)
    zdiag = np.array(
        [[1.0 - 2.0 * ((j >> k) & 1) for k in range(QUBITS)] for j in range(DIM)],
        dtype=np.float32,
    )
    return jnp.asarray(gk_T), jnp.asarray(u_fixed_T), jnp.asarray(zdiag)


def fuse_classifier(zdiag, w_cls, b_cls):
    """Fold <Z> readout + classifier weight + classifier bias into one (DIM, C) matrix.

    scores = probs @ zdiag @ w_cls + b_cls
           = probs @ (zdiag @ w_cls + ones(DIM,1) @ b_cls)     since sum_j probs[b,j] == 1.
    """
    return (zdiag @ w_cls + jnp.ones((DIM, 1), jnp.float32) @ b_cls).astype(jnp.float32)


# --------------------------------- Pallas kernel ---------------------------------
def hybrid_cq_kernel(x_ref, w_enc_ref, b_enc_ref, ufix_ref, zw_ref, out_ref):
    # 1) classical embedding: enc(x)
    x = x_ref[...]                                                     # (B, F)
    h = jnp.dot(x, w_enc_ref[...], preferred_element_type=jnp.float32) + b_enc_ref[...]
    # 2) q_in = tanh(h) * pi / 2   (tanh / cos / sin run on the EUP slot)
    q_in = jnp.tanh(h) * (jnp.pi / 2.0)                                # (B, Q)
    half = 0.5 * q_in
    c = jnp.cos(half)                                                  # (B, Q)
    s = jnp.sin(half)                                                  # (B, Q)

    # 3) RY angle-embedding of |0...0> is a product state: the amplitude of basis
    #    index j is prod_k (c_k if bit_k(j)==0 else s_k).  Pure VPU select/mul, no MXU.
    b = x.shape[0]
    col = jax.lax.broadcasted_iota(jnp.int32, (b, DIM), 1)             # (B, DIM)
    state = jnp.where((col & 1) == 1, s[:, 0:1], c[:, 0:1])            # wire 0
    for k in range(1, QUBITS):
        bit_k = (col >> k) & 1
        state = state * jnp.where(bit_k == 1, s[:, k:k + 1], c[:, k:k + 1])

    # fixed variational layers (RY(params) + CNOT ring), precomposed into one matrix
    state = jnp.dot(state, ufix_ref[...], preferred_element_type=jnp.float32)  # (B, DIM)

    # 4+5) <Z_k> readout + classifier (weights and bias pre-fused into zw)
    probs = state * state                                              # (B, DIM)
    scores = jnp.dot(probs, zw_ref[...], preferred_element_type=jnp.float32)   # (B, C)
    out_ref[...] = scores.astype(out_ref.dtype)


def hybrid_cq_predictor(x, w_enc, b_enc, u_fixed_T, zw):
    B, F = x.shape
    C = zw.shape[1]
    # Single block covers the whole batch up to MAX_BATCH_TILE rows (block == full dim, so
    # no sublane divisibility requirement).  Larger batches are tiled on a parallel grid.
    if B <= MAX_BATCH_TILE:
        tile_b = B
    else:
        tile_b = MAX_BATCH_TILE
        assert B % tile_b == 0, "large batches must be a multiple of the batch tile"
    grid = (B // tile_b,)
    return pl.pallas_call(
        hybrid_cq_kernel,
        out_shape=jax.ShapeDtypeStruct((B, C), jnp.float32),
        grid=grid,
        in_specs=[
            pl.BlockSpec((tile_b, F), lambda i: (i, 0)),
            pl.BlockSpec((F, QUBITS), lambda i: (0, 0)),
            pl.BlockSpec((1, QUBITS), lambda i: (0, 0)),
            pl.BlockSpec((DIM, DIM), lambda i: (0, 0)),
            pl.BlockSpec((DIM, C), lambda i: (0, 0)),
        ],
        out_specs=pl.BlockSpec((tile_b, C), lambda i: (i, 0)),
        compiler_params=pltpu.CompilerParams(
            dimension_semantics=("parallel",)),
    )(x, w_enc, b_enc, u_fixed_T, zw)


# --------------------------- pure-JAX reference (check) ---------------------------
def reference_forward(x, w_enc, b_enc, gk_T, u_fixed_T, zdiag, w_cls, b_cls):
    """Un-fused reference: explicit RY-embedding matmuls, separate Z readout + classifier."""
    h = x @ w_enc + b_enc
    q_in = jnp.tanh(h) * (jnp.pi / 2.0)
    c = jnp.cos(0.5 * q_in)
    s = jnp.sin(0.5 * q_in)
    state = jnp.zeros((x.shape[0], DIM), jnp.float32).at[:, 0].set(1.0)
    for k in range(QUBITS):
        state = c[:, k:k + 1] * state + s[:, k:k + 1] * (state @ gk_T[k])
    state = state @ u_fixed_T
    q_out = (state * state) @ zdiag
    return q_out @ w_cls + b_cls


# --------------------------------------- main -------------------------------------
if __name__ == "__main__":
    key = jax.random.PRNGKey(0)
    k_x, k_we, k_be, k_qp, k_wc, k_bc = jax.random.split(key, 6)

    # inputs
    x = jax.random.normal(k_x, (BATCH, IN_FEATURES), dtype=jnp.float32)

    # parameters (deterministic synthetic init)
    w_enc = jax.random.normal(k_we, (IN_FEATURES, QUBITS), dtype=jnp.float32) * 0.2
    b_enc = jax.random.normal(k_be, (1, QUBITS), dtype=jnp.float32) * 0.1
    # xavier-uniform-like init for q_params (qubits, q_depth)
    bound = float(np.sqrt(6.0 / (QUBITS + Q_DEPTH)))
    q_params = jax.random.uniform(k_qp, (QUBITS, Q_DEPTH),
                                  minval=-bound, maxval=bound, dtype=jnp.float32)
    w_cls = jax.random.normal(k_wc, (QUBITS, NO_CLASSES), dtype=jnp.float32) * 0.3
    b_cls = jax.random.normal(k_bc, (1, NO_CLASSES), dtype=jnp.float32) * 0.1

    gk_T, u_fixed_T, zdiag = build_circuit_constants(np.asarray(q_params))
    zw = fuse_classifier(zdiag, w_cls, b_cls)   # offline fusion of readout + classifier

    scores = hybrid_cq_predictor(x, w_enc, b_enc, u_fixed_T, zw)
    scores = jax.block_until_ready(scores)

    ref = reference_forward(x, w_enc, b_enc, gk_T, u_fixed_T, zdiag, w_cls, b_cls)
    np.testing.assert_allclose(np.asarray(scores), np.asarray(ref), rtol=1e-3, atol=1e-3)

    print("KERNEL_OK")
</pallas_src>

<mosaic_0001>
module attributes {stable_mosaic.version = 11 : i64} {
  func.func @hybrid_cq_kernel(%arg0: i32, %arg1: memref<8x16xf32, #tpu.memory_space<vmem>>, %arg2: memref<16x4xf32, #tpu.memory_space<vmem>>, %arg3: memref<1x4xf32, #tpu.memory_space<vmem>>, %arg4: memref<16x16xf32, #tpu.memory_space<vmem>>, %arg5: memref<16x3xf32, #tpu.memory_space<vmem>>, %arg6: memref<8x3xf32, #tpu.memory_space<vmem>>) attributes {dimension_semantics = [#tpu.dimension_semantics<parallel>], iteration_bounds = array<i64: 1>, scalar_prefetch = 0 : i64, scratch_operands = 0 : i64, tpu.core_type = #tpu.core_type<tc>, window_params = [{transform_indices = @transform_0, window_bounds = array<i64: 8, 16>}, {pipeline_mode = #tpu.pipeline_mode<synchronous>, transform_indices = @transform_1, window_bounds = array<i64: 16, 4>}, {pipeline_mode = #tpu.pipeline_mode<synchronous>, transform_indices = @transform_2, window_bounds = array<i64: 1, 4>}, {pipeline_mode = #tpu.pipeline_mode<synchronous>, transform_indices = @transform_3, window_bounds = array<i64: 16, 16>}, {pipeline_mode = #tpu.pipeline_mode<synchronous>, transform_indices = @transform_4, window_bounds = array<i64: 16, 3>}, {transform_indices = @transform_5, window_bounds = array<i64: 8, 3>}]} {
    %c0 = arith.constant 0 : index
    %c0_0 = arith.constant 0 : index
    %0 = vector.load %arg1[%c0, %c0_0] : memref<8x16xf32, #tpu.memory_space<vmem>>, vector<8x16xf32>
    %c0_1 = arith.constant 0 : index
    %c0_2 = arith.constant 0 : index
    %1 = vector.load %arg2[%c0_1, %c0_2] : memref<16x4xf32, #tpu.memory_space<vmem>>, vector<16x4xf32>
    %cst = arith.constant dense<0.000000e+00> : vector<8x4xf32>
    %2 = tpu.matmul %0, %1, %cst {dimension_numbers = #tpu.dot_dimension_numbers<[1], [0], [0], [1], [0, 0, 1, 1], [], []>} : vector<8x16xf32>, vector<16x4xf32>, vector<8x4xf32> -> vector<8x4xf32>
    %c0_3 = arith.constant 0 : index
    %c0_4 = arith.constant 0 : index
    %3 = vector.load %arg3[%c0_3, %c0_4] : memref<1x4xf32, #tpu.memory_space<vmem>>, vector<1x4xf32>
    %4 = vector.broadcast %3 : vector<1x4xf32> to vector<8x4xf32>
    %5 = arith.addf %2, %4 : vector<8x4xf32>
    %6 = math.tanh %5 : vector<8x4xf32>
    %cst_5 = arith.constant 1.57079637 : f32
    %7 = vector.broadcast %cst_5 : f32 to vector<8x4xf32>
    %8 = arith.mulf %6, %7 : vector<8x4xf32>
    %cst_6 = arith.constant 5.000000e-01 : f32
    %9 = vector.broadcast %cst_6 : f32 to vector<8x4xf32>
    %10 = arith.mulf %9, %8 : vector<8x4xf32>
    %11 = math.cos %10 : vector<8x4xf32>
    %12 = math.sin %10 : vector<8x4xf32>
    %13 = tpu.iota {dimensions = array<i32: 1>} : vector<8x16xi32>
    %c1_i32 = arith.constant 1 : i32
    %14 = vector.broadcast %c1_i32 : i32 to vector<8x16xi32>
    %15 = arith.andi %13, %14 : vector<8x16xi32>
    %c1_i32_7 = arith.constant 1 : i32
    %16 = vector.broadcast %c1_i32_7 : i32 to vector<8x16xi32>
    %17 = arith.cmpi eq, %15, %16 : vector<8x16xi32>
    %18 = vector.extract_strided_slice %12 {offsets = [0, 0], sizes = [8, 1], strides = [1, 1]} : vector<8x4xf32> to vector<8x1xf32>
    %19 = vector.extract_strided_slice %11 {offsets = [0, 0], sizes = [8, 1], strides = [1, 1]} : vector<8x4xf32> to vector<8x1xf32>
    %20 = vector.shape_cast %18 : vector<8x1xf32> to vector<8x1xf32>
    %21 = vector.broadcast %20 : vector<8x1xf32> to vector<8x16xf32>
    %22 = vector.shape_cast %19 : vector<8x1xf32> to vector<8x1xf32>
    %23 = vector.broadcast %22 : vector<8x1xf32> to vector<8x16xf32>
    %24 = arith.select %17, %21, %23 : vector<8x16xi1>, vector<8x16xf32>
    %c1_i32_8 = arith.constant 1 : i32
    %25 = vector.broadcast %c1_i32_8 : i32 to vector<8x16xi32>
    %26 = arith.shrsi %13, %25 : vector<8x16xi32>
    %c1_i32_9 = arith.constant 1 : i32
    %27 = vector.broadcast %c1_i32_9 : i32 to vector<8x16xi32>
    %28 = arith.andi %26, %27 : vector<8x16xi32>
    %c1_i32_10 = arith.constant 1 : i32
    %29 = vector.broadcast %c1_i32_10 : i32 to vector<8x16xi32>
    %30 = arith.cmpi eq, %28, %29 : vector<8x16xi32>
    %31 = vector.extract_strided_slice %12 {offsets = [0, 1], sizes = [8, 1], strides = [1, 1]} : vector<8x4xf32> to vector<8x1xf32>
    %32 = vector.extract_strided_slice %11 {offsets = [0, 1], sizes = [8, 1], strides = [1, 1]} : vector<8x4xf32> to vector<8x1xf32>
    %33 = vector.shape_cast %31 : vector<8x1xf32> to vector<8x1xf32>
    %34 = vector.broadcast %33 : vector<8x1xf32> to vector<8x16xf32>
    %35 = vector.shape_cast %32 : vector<8x1xf32> to vector<8x1xf32>
    %36 = vector.broadcast %35 : vector<8x1xf32> to vector<8x16xf32>
    %37 = arith.select %30, %34, %36 : vector<8x16xi1>, vector<8x16xf32>
    %38 = arith.mulf %24, %37 : vector<8x16xf32>
    %c2_i32 = arith.constant 2 : i32
    %39 = vector.broadcast %c2_i32 : i32 to vector<8x16xi32>
    %40 = arith.shrsi %13, %39 : vector<8x16xi32>
    %c1_i32_11 = arith.constant 1 : i32
    %41 = vector.broadcast %c1_i32_11 : i32 to vector<8x16xi32>
    %42 = arith.andi %40, %41 : vector<8x16xi32>
    %c1_i32_12 = arith.constant 1 : i32
    %43 = vector.broadcast %c1_i32_12 : i32 to vector<8x16xi32>
    %44 = arith.cmpi eq, %42, %43 : vector<8x16xi32>
    %45 = vector.extract_strided_slice %12 {offsets = [0, 2], sizes = [8, 1], strides = [1, 1]} : vector<8x4xf32> to vector<8x1xf32>
    %46 = vector.extract_strided_slice %11 {offsets = [0, 2], sizes = [8, 1], strides = [1, 1]} : vector<8x4xf32> to vector<8x1xf32>
    %47 = vector.shape_cast %45 : vector<8x1xf32> to vector<8x1xf32>
    %48 = vector.broadcast %47 : vector<8x1xf32> to vector<8x16xf32>
    %49 = vector.shape_cast %46 : vector<8x1xf32> to vector<8x1xf32>
    %50 = vector.broadcast %49 : vector<8x1xf32> to vector<8x16xf32>
    %51 = arith.select %44, %48, %50 : vector<8x16xi1>, vector<8x16xf32>
    %52 = arith.mulf %38, %51 : vector<8x16xf32>
    %c3_i32 = arith.constant 3 : i32
    %53 = vector.broadcast %c3_i32 : i32 to vector<8x16xi32>
    %54 = arith.shrsi %13, %53 : vector<8x16xi32>
    %c1_i32_13 = arith.constant 1 : i32
    %55 = vector.broadcast %c1_i32_13 : i32 to vector<8x16xi32>
    %56 = arith.andi %54, %55 : vector<8x16xi32>
    %c1_i32_14 = arith.constant 1 : i32
    %57 = vector.broadcast %c1_i32_14 : i32 to vector<8x16xi32>
    %58 = arith.cmpi eq, %56, %57 : vector<8x16xi32>
    %59 = vector.extract_strided_slice %12 {offsets = [0, 3], sizes = [8, 1], strides = [1, 1]} : vector<8x4xf32> to vector<8x1xf32>
    %60 = vector.extract_strided_slice %11 {offsets = [0, 3], sizes = [8, 1], strides = [1, 1]} : vector<8x4xf32> to vector<8x1xf32>
    %61 = vector.shape_cast %59 : vector<8x1xf32> to vector<8x1xf32>
    %62 = vector.broadcast %61 : vector<8x1xf32> to vector<8x16xf32>
    %63 = vector.shape_cast %60 : vector<8x1xf32> to vector<8x1xf32>
    %64 = vector.broadcast %63 : vector<8x1xf32> to vector<8x16xf32>
    %65 = arith.select %58, %62, %64 : vector<8x16xi1>, vector<8x16xf32>
    %66 = arith.mulf %52, %65 : vector<8x16xf32>
    %c0_15 = arith.constant 0 : index
    %c0_16 = arith.constant 0 : index
    %67 = vector.load %arg4[%c0_15, %c0_16] : memref<16x16xf32, #tpu.memory_space<vmem>>, vector<16x16xf32>
    %cst_17 = arith.constant dense<0.000000e+00> : vector<8x16xf32>
    %68 = tpu.matmul %66, %67, %cst_17 {dimension_numbers = #tpu.dot_dimension_numbers<[1], [0], [0], [1], [0, 0, 1, 1], [], []>} : vector<8x16xf32>, vector<16x16xf32>, vector<8x16xf32> -> vector<8x16xf32>
    %69 = arith.mulf %68, %68 : vector<8x16xf32>
    %c0_18 = arith.constant 0 : index
    %c0_19 = arith.constant 0 : index
    %70 = vector.load %arg5[%c0_18, %c0_19] : memref<16x3xf32, #tpu.memory_space<vmem>>, vector<16x3xf32>
    %cst_20 = arith.constant dense<0.000000e+00> : vector<8x3xf32>
    %71 = tpu.matmul %69, %70, %cst_20 {dimension_numbers = #tpu.dot_dimension_numbers<[1], [0], [0], [1], [0, 0, 1, 1], [], []>} : vector<8x16xf32>, vector<16x3xf32>, vector<8x3xf32> -> vector<8x3xf32>
    %c0_21 = arith.constant 0 : index
    %c0_22 = arith.constant 0 : index
    %72 = vector.load %arg6[%c0_21, %c0_22] : memref<8x3xf32, #tpu.memory_space<vmem>>, vector<8x3xf32>
    tpu.vector_store %arg6[%c0_21, %c0_22], %71 {strides = array<i32>} : memref<8x3xf32, #tpu.memory_space<vmem>>, vector<8x3xf32>,
    return
  }
  func.func @transform_0(%arg0: i32) -> (i32, i32) {
    %c0_i32 = arith.constant 0 : i32
    %c0_i32_0 = arith.constant 0 : i32
    return %arg0, %c0_i32 : i32, i32
  }
  func.func @transform_1(%arg0: i32) -> (i32, i32) {
    %c0_i32 = arith.constant 0 : i32
    %c0_i32_0 = arith.constant 0 : i32
    %c0_i32_1 = arith.constant 0 : i32
    return %c0_i32, %c0_i32_0 : i32, i32
  }
  func.func @transform_2(%arg0: i32) -> (i32, i32) {
    %c0_i32 = arith.constant 0 : i32
    %c0_i32_0 = arith.constant 0 : i32
    %c0_i32_1 = arith.constant 0 : i32
    return %c0_i32, %c0_i32_0 : i32, i32
  }
  func.func @transform_3(%arg0: i32) -> (i32, i32) {
    %c0_i32 = arith.constant 0 : i32
    %c0_i32_0 = arith.constant 0 : i32
    %c0_i32_1 = arith.constant 0 : i32
    return %c0_i32, %c0_i32_0 : i32, i32
  }
  func.func @transform_4(%arg0: i32) -> (i32, i32) {
    %c0_i32 = arith.constant 0 : i32
    %c0_i32_0 = arith.constant 0 : i32
    %c0_i32_1 = arith.constant 0 : i32
    return %c0_i32, %c0_i32_0 : i32, i32
  }
  func.func @transform_5(%arg0: i32) -> (i32, i32) {
    %c0_i32 = arith.constant 0 : i32
    %c0_i32_0 = arith.constant 0 : i32
    return %arg0, %c0_i32 : i32, i32
  }
}

</mosaic_0001>

<bundles_post_ra>
// kernel: tpu_custom_call.1
= control target key start
LH: loop header
LB: loop body
LE: loop exit
PB: predicated region body
PF: predicated region fallthrough
CT: control target
= control target key end

     0   :  { %v605_v0 = vmov 0.0|0.0   ;;  %vm606_vm0 = vmmov 0   ;;  %v607_v3 = vmov 0.0   ;;  %vm30_vm1 = vcmask 130048   ;;  %s699_s1 = inlined_call_operand.vmem [shape: f32[16,4], index: 1, kind: input, shape index: {}]   ;;  %s700_s0 = inlined_call_operand.vmem [shape: f32[8,16], index: 0, kind: input, shape index: {}]   ;;  %s701_s2 = inlined_call_operand.vmem [shape: f32[1,4], index: 2, kind: input, shape index: {}]   ;;  %s702_s3 = inlined_call_operand.vmem [shape: f32[16,16], index: 3, kind: input, shape index: {}]   ;;  %s703_s4 = inlined_call_operand.vmem [shape: f32[16,3], index: 4, kind: input, shape index: {}]   ;;  %s704_s5 = inlined_call_operand.vmem [shape: f32[8,3], index: 5, kind: output, shape index: {}]  }
   0x1   :  { %567 = vmatprep.subr.bf16.mxu0 %v605_v0  ;;  %v21_v1 = vld [vmem:[%s699_s1] sm:$0xff]  ;;  %v22_v2 = vld [vmem:[%s699_s1 + $0x8] sm:$0xff]  ;;  %550 = vmatprep.mubr.msk.f32.mxu0 %vm606_vm0, %v607_v3  ;;  %v608_v6 = vmov 1   ;;  %v609_v7 = vmov 0   ;;  %v610_v26 = vmov 2102212464  }
   0x2   :  { %v568_v4 = vpack.c.bf16 %v22_v2, %v21_v1  ;;  %570 = vmatprep.subr.bf16.mxu1 %v605_v0  ;;  %557 = vmatprep.mubr.msk.f32.mxu1 %vm606_vm0, %v607_v3  ;;  %v20_v5 = vld [vmem:[%s700_s0] sm:$0xff]  ;;  %v611_v28 = vmov 920167782   ;;  %v612_v32 = vmov 1326507024  }
   0x3   :  { %594 = vset.pattern.permute.xlu1 %v608_v6  ;;  %593 = vset.pattern.permute.xlu0 %v609_v7  ;;  %v525_v8 = vld [vmem:[%s701_s2] ss:$0 sm:$0xff]  ;;  %v613_v34 = vmov 683565275   ;;  %v614_v36 = vmov 2475754826  }
   0x4   :  { %569 = vmatpush3.bf16.msra.mxu0 %v568_v4  ;;  %v615_v39 = vmov 2131351028  }
   0x5   :  { %573 = vmatprep.subr.bf16.mxu0 %v605_v0 }
   0x7   :  { %551 = vmatmul.mubr.msk.f32.vlgmr.msra.gmra.mrb[0].mxu0 %vm30_vm1, %v20_v5 }
   0x8   :  { %564 = vmatprep.mubr.msk.f32.mxu0 %vm606_vm0, %v607_v3 }
  0xda   :  { %v100_v9 = vpop.f32.mrb[0].mxu0 }
  0xdb   :  { %v101_v10 = vadd.f32 %v525_v8, %v100_v9  ;;  %v552_v11 = vpop.f32.mrb[1].mxu0 }
  0xdd   :  { %599 = vtanh.f32 %v101_v10 }
  0xe7   :  { %v600_v12 = vpop.eup %599 }
  0xe8   :  { %v105_v13 = vmul.f32 1.5707964, %v600_v12 }
  0xea   :  { %v661_v14 = vmul.f32 0.5, %v105_v13 }
  0xec   :  { %v110_v15 = vand.u32 2139095040, %v661_v14  ;;  %v107_v16 = vand.u32 2147483647, %v661_v14  ;;  %vm109_vm9 = vcmp.lt.s32.totalorder %v661_v14, 0 }
  0xee   :  { %v111_v17 = vshrl.u32 %v110_v15, 23  ;;  %v114_v19 = vand.u32 8388607, %v107_v16  ;;  %vm108_vm10 = vcmp.le.f32.partialorder %v107_v16, 0.7853982 }
  0xf0   :  { %v527_v18 = vadd.s32 4294967169, %v111_v17  ;;  %v115_v22 = vor.u32 8388608, %v114_v19 }
  0xf2   :  { %v117_v20 = vadd.s32 1, %v527_v18  ;;  %v155_v30 = vshll.u32 %v115_v22, 8 }
  0xf4   :  { %vm118_vm2 = vcmp.gt.s32.totalorder %v117_v20, 0 }
  0xf5   :  { %v119_v21 = vsel %vm118_vm2, %v117_v20, 0  ;;  %vm199_vm2 = vweird.f32 %v661_v14 }
  0xf6   :  { %v121_v23 = vand.u32 31, %v119_v21  ;;  %v120_v24 = vshrl.u32 %v119_v21, 5 }
  0xf8   :  { %v122_v25 = vsub.s32 32, %v121_v23  ;;  %v133_v27 = vshll.u32 %v610_v26, %v121_v23  ;;  %v136_v29 = vshll.u32 %v611_v28, %v121_v23  ;;  %v124_v35 = vshll.u32 %v613_v34, %v121_v23 }
  0xf9   :  { %v127_v38 = vshll.u32 %v614_v36, %v121_v23  ;;  %v130_v41 = vshll.u32 %v615_v39, %v121_v23  ;;  %vm142_vm3 = vcmp.lt.s32.totalorder %v120_v24, 4  ;;  %vm139_vm4 = vcmp.lt.s32.totalorder %v120_v24, 1 }
  0xfa   :  { %v134_v31 = vshrl.u32 %v611_v28, %v122_v25  ;;  %v137_v33 = vshrl.u32 %v612_v32, %v122_v25  ;;  %v125_v37 = vshrl.u32 %v614_v36, %v122_v25  ;;  %v128_v40 = vshrl.u32 %v615_v39, %v122_v25 }
  0xfb   :  { %v131_v42 = vshrl.u32 %v610_v26, %v122_v25  ;;  %v123_v46 = vshrl.u32 %v613_v34, %v122_v25  ;;  %vm140_vm5 = vcmp.lt.s32.totalorder %v120_v24, 2  ;;  %vm141_vm6 = vcmp.lt.s32.totalorder %v120_v24, 3 }
  0xfc   :  { %v135_v43 = vor.u32 %v134_v31, %v133_v27  ;;  %v138_v44 = vor.u32 %v137_v33, %v136_v29  ;;  %v126_v45 = vor.u32 %v125_v37, %v124_v35  ;;  %v129_v47 = vor.u32 %v128_v40, %v127_v38 }
  0xfd   :  { %v132_v48 = vor.u32 %v131_v42, %v130_v41 }
  0xfe   :  { %v148_v49 = vsel %vm142_vm3, %v135_v43, 920167782  ;;  %v152_v50 = vsel %vm142_vm3, %v138_v44, 1326507024  ;;  %v147_v52 = vsel %vm139_vm4, %v126_v45, %v129_v47  ;;  %v143_v55 = vsel %vm139_vm4, %v123_v46, %v126_v45 }
  0xff   :  { %v144_v51 = vsel %vm142_vm3, %v132_v48, 2102212464  ;;  %v149_v53 = vsel %vm141_vm6, %v132_v48, %v148_v49  ;;  %v151_v54 = vsel %vm139_vm4, %v129_v47, %v132_v48  ;;  %v153_v58 = vsel %vm141_vm6, %v135_v43, %v152_v50  ;;  %v369_v50 = vld [vmem:[%s702_s3 + $0x8] sm:$0xff] }
 0x100   :  { %v145_v56 = vsel %vm141_vm6, %v129_v47, %v144_v51  ;;  %v150_v57 = vsel %vm140_vm5, %v147_v52, %v149_v53  ;;  %v154_v59 = vsel %vm140_vm5, %v151_v54, %v153_v58  ;;  %v616_v48 = vmov 2   ;;  %v444_v52 = vld [vmem:[%s703_s4] sm:$0xff]  ;;  %v445_v53 = vld [vmem:[%s703_s4 + $0x8] sm:$0xff] }
 0x101   :  { %v667_v60 = vmul.u32.u64.low %v155_v30, %v150_v57  ;;  %v668_v61 = vmul.u32.u64.high %v155_v30, %v150_v57, %v667_v60  ;;  %v670_v62 = vmul.u32.u64.low %v155_v30, %v154_v59  ;;  %v671_v63 = vmul.u32.u64.high %v155_v30, %v154_v59, %v670_v62 }
 0x102   :  { %v146_v0 = vsel %vm140_vm5, %v143_v55, %v145_v56  ;;  %v617_v49 = vmov 3   ;;  %v574_v54 = vpack.c.bf16 %v445_v53, %v444_v52  ;;  %v314_v55 = vlaneseq }
 0x103   :  { %v165_v1 = vadd.s32 1, %v668_v61  ;;  %v162_v2 = vmul.u32 %v155_v30, %v146_v0  ;;  %vm164_vm7 = vc.u32 %v671_v63, %v667_v60  ;;  %v163_v15 = vadd.s32 %v667_v60, %v671_v63 }
 0x104   :  { %575 = vmatpush3.bf16.msra.mxu0 %v574_v54  ;;  %v315_v56 = vand.u32 127, %v314_v55 }
 0x105   :  { %v166_v3 = vsel %vm164_vm7, %v165_v1, %v668_v61  ;;  %vm519_vm7 = vcmask 23552  }
 0x106   :  { %v167_v4 = vadd.s32 %v166_v3, %v162_v2  ;;  %v329_v57 = vshra.s32 %v315_v56, 1  ;;  %v342_v60 = vshra.s32 %v315_v56, 2  ;;  %v316_v62 = vand.u32 1, %v315_v56 }
 0x107   :  { %v355_v2 = vshra.s32 %v315_v56, 3 }
 0x108   :  { %v168_v5 = vadd.s32 536870912, %v167_v4  ;;  %v330_v61 = vand.u32 1, %v329_v57  ;;  %v343_v1 = vand.u32 1, %v342_v60  ;;  %vm317_vm4 = vcmp.eq.s32.totalorder %v316_v62, 1 }
 0x109   :  { %v356_v3 = vand.u32 1, %v355_v2 }
 0x10a   :  { %v169_v6 = vshrl.u32 %v168_v5, 30  ;;  %vm331_vm3 = vcmp.eq.s32.totalorder %v330_v61, 1  ;;  %vm344_vm5 = vcmp.eq.s32.totalorder %v343_v1, 1 }
 0x10b   :  { %vm357_vm6 = vcmp.eq.s32.totalorder %v356_v3, 1 }
 0x10c   :  { %v170_v7 = vshll.u32 %v169_v6, 30  ;;  %v193_v28 = vsub.s32 4, %v169_v6 }
 0x10e   :  { %v171_v8 = vsub.s32 %v167_v4, %v170_v7  ;;  %v194_v31 = vsel %vm109_vm9, %v193_v28, %v169_v6 }
 0x10f   :  { %v196_v33 = vsel %vm108_vm10, 0, %v194_v31 }
 0x110   :  { %v173_v9 = vsub.s32 0, %v171_v8  ;;  %v303_v34 = vadd.s32 3, %v196_v33  ;;  %v200_v36 = vand.u32 3, %v196_v33 }
 0x112   :  { %v528_v10 = vmin.u32 %v173_v9, %v171_v8  ;;  %v304_v35 = vand.u32 3, %v303_v34  ;;  %vm205_vm12 = vcmp.eq.s32.totalorder %v200_v36, 2  ;;  %vm202_vm14 = vcmp.eq.s32.totalorder %v200_v36, 0 }
 0x113   :  { %vm201_vm0 = vcmp.lt.s32.totalorder %v200_v36, 2 }
 0x114   :  { %v175_v11 = vclz %v528_v10  ;;  %vm309_vm11 = vcmp.eq.s32.totalorder %v304_v35, 2  ;;  %vm306_vm13 = vcmp.eq.s32.totalorder %v304_v35, 0  ;;  %vm305_vm15 = vcmp.lt.s32.totalorder %v304_v35, 2 }
 0x116   :  { %v529_v12 = vadd.s32 4294967294, %v175_v11 }
 0x118   :  { %vm530_vm8 = vcmp.lt.s32.totalorder %v529_v12, 0 }
 0x119   :  { %v178_v13 = vsel %vm530_vm8, 0, %v529_v12 }
 0x11a   :  { %v179_v17 = vsub.s32 32, %v178_v13  ;;  %v183_v18 = vsub.s32 4294967266, %v178_v13  ;;  %v180_v19 = vshll.u32 %v171_v8, %v178_v13 }
 0x11c   :  { %v181_v20 = vshrl.u32 %v163_v15, %v179_v17  ;;  %v184_v21 = vadd.s32 127, %v183_v18 }
 0x11e   :  { %v182_v22 = vor.u32 %v181_v20, %v180_v19  ;;  %v185_v23 = vshll.u32 %v184_v21, 23 }
 0x120   :  { %v186_v24 = vor.u32 4788187, %v185_v23  ;;  %v189_v26 = vcvt.s32.f32 %v182_v22 }
 0x122   :  { %v187_v25 = vand.u32 2147483647, %v186_v24 }
 0x124   :  { %v190_v27 = vmul.f32 %v189_v26, %v187_v25 }
 0x126   :  { %v191_v29 = vxor.u32 2147483648, %v190_v27 }
 0x128   :  { %v192_v30 = vsel %vm109_vm9, %v191_v29, %v190_v27 }
 0x129   :  { %v195_v32 = vsel %vm108_vm10, %v661_v14, %v192_v30  ;;  %v368_v14 = vld [vmem:[%s702_s3] sm:$0xff] }
 0x12a   :  { %601 = vcosq.f32 %v195_v32  ;;  %v571_v51 = vpack.c.bf16 %v369_v50, %v368_v14 }
 0x12b   :  { %603 = vsinq.f32 %v195_v32 }
 0x12c   :  { %572 = vmatpush3.bf16.msra.mxu1 %v571_v51 }
 0x134   :  { %v602_v37 = vpop.eup %601 }
 0x135   :  { %v604_v38 = vpop.eup %603  ;;  %v206_v39 = vxor.u32 2147483648, %v602_v37 }
 0x136   :  { %v203_v40 = vxor.u32 2147483648, %v604_v38 }
 0x137   :  { %v311_v41 = vsel %vm309_vm11, %v206_v39, %v604_v38  ;;  %v207_v16 = vsel %vm205_vm12, %v206_v39, %v604_v38 }
 0x138   :  { %v308_v42 = vsel %vm306_vm13, %v602_v37, %v203_v40  ;;  %v204_v43 = vsel %vm202_vm14, %v602_v37, %v203_v40 }
 0x139   :  { %v312_v44 = vsel %vm305_vm15, %v308_v42, %v311_v41  ;;  %v208_v45 = vsel %vm201_vm0, %v204_v43, %v207_v16 }
 0x13a   :  { %v313_v46 = vsel %vm199_vm2, nan, %v312_v44  ;;  %v209_v47 = vsel %vm199_vm2, nan, %v208_v45 }
 0x13b   :  { %333 = vperm.xlu1 %594, %v313_v46   ;;  %320 = vperm.xlu0 %593, %v313_v46  }
 0x13f   :  { %337 = vperm.xlu1 %594, %v209_v47   ;;  %325 = vperm.xlu0 %593, %v209_v47  }
 0x143   :  { %596 = vset.pattern.permute.xlu1 %v616_v48  ;;  %595 = vset.pattern.permute.xlu0 %v616_v48 }
 0x144   :  { %350 = vperm.xlu1 %596, %v209_v47   ;;  %346 = vperm.xlu0 %595, %v313_v46  }
 0x148   :  { %597 = vset.pattern.permute.xlu1 %v617_v49  ;;  %598 = vset.pattern.permute.xlu0 %v617_v49 }
 0x149   :  { %359 = vperm.xlu1 %597, %v313_v46   ;;  %363 = vperm.xlu0 %598, %v209_v47  }
 0x1ba   :  { %v334_v58 = vpop.permute.xlu1 %333  ;;  %v321_v59 = vpop.permute.xlu0 %320 }
 0x1be   :  { %v338_v63 = vpop.permute.xlu1 %337  ;;  %v326_v0 = vpop.permute.xlu0 %325 }
 0x1bf   :  { %v340_v4 = vsel %vm331_vm3, %v334_v58, %v338_v63  ;;  %v328_v5 = vsel %vm317_vm4, %v321_v59, %v326_v0 }
 0x1c0   :  { %v341_v9 = vmul.f32 %v340_v4, %v328_v5 }
 0x1c3   :  { %v351_v6 = vpop.permute.xlu1 %350  ;;  %v347_v7 = vpop.permute.xlu0 %346 }
 0x1c4   :  { %v353_v8 = vsel %vm344_vm5, %v347_v7, %v351_v6 }
 0x1c5   :  { %v354_v10 = vmul.f32 %v353_v8, %v341_v9 }
 0x1c8   :  { %v360_v11 = vpop.permute.xlu1 %359  ;;  %v364_v12 = vpop.permute.xlu0 %363 }
 0x1c9   :  { %v366_v13 = vsel %vm357_vm6, %v360_v11, %v364_v12 }
 0x1ca   :  { %v367_v15 = vmul.f32 %v366_v13, %v354_v10 }
 0x1cc   :  { %558 = vmatmul.mubr.msk.f32.vlgmr.msra.gmra.mrb[0].mxu1 %vm30_vm1, %v367_v15 }
 0x29f   :  { %v439_v17 = vpop.f32.mrb[0].mxu1 }
 0x2a0   :  { %v443_v18 = vmul.f32 %v439_v17, %v439_v17  ;;  %v559_v19 = vpop.f32.mrb[1].mxu1 }
 0x2a2   :  { %565 = vmatmul.mubr.msk.f32.vlgmr.msra.gmra.mrb[2].mxu0 %vm30_vm1, %v443_v18 }
 0x375   :  { %v515_v20 = vpop.f32.mrb[2].mxu0 }
 0x376   :  { %520 = vst.msk [vmem:[%s704_s5] sm:$0xff] %vm519_vm7, %v515_v20  ;;  %v566_v21 = vpop.f32.mrb[3].mxu0 }

</bundles_post_ra>
